<compile_context>
chip_gen: v7x
topology: tpu7x:2x2x1
jax: 0.10.0
libtpu: 0.0.40
codegen_flags: <defaults>
</compile_context>

<pallas_src>
import jax
import jax.numpy as jnp
from jax.experimental import pallas as pl
from jax.experimental.pallas import tpu as pltpu

PACK = 4  # batch rows lane-packed per vreg row (E=32 -> 128 lanes). Use 2 on v5e.


# ---------------------------------------------------------------------------
# Pallas kernel: one (packed) batch tile of the fused JobFM hot path.
# ---------------------------------------------------------------------------
def jobfm_kernel(
    first_x_ref,            # [TB, P*8]    f32  packed concat(co_xv[:,jobco], ca_xv[:,jobca])
    city_ref,               # [TB, P*E]    f32  packed city embedding rows
    type_ref,               # [TB, P*E]    f32  packed type embedding rows
    wd0a_ref, wd0b_ref,     # [P*E, P*2E]  bf16 block-diag deep layer 0 (split concat)
    bd0_ref,                # [1,  P*2E]   f32
    wd1_ref, bd1_ref,       # [P*2E,P*2E] bf16, [1,P*2E] f32
    wd2_ref, bd2_ref,       # [P*2E,P*2E] bf16, [1,P*2E] f32
    whead_ref,              # [P*(8+3E), P*E] bf16  rows = [w1@wfc_f | wfc_s | wd3@wfc_d]
    bfc_ref,                # [1,  P*E]    f32  fully folded head bias
    out_ref,                # [TB, P*E]    f32  packed fm_job tile
):
    f32 = jnp.float32
    bf16 = jnp.bfloat16

    k1 = first_x_ref.shape[1]      # P*8
    k2 = city_ref.shape[1]         # P*E
    kh = whead_ref.shape[0]        # P*(8+3E)

    city = city_ref[...]
    typ = type_ref[...]

    # ---- second-order FM: with exactly 2 fields,
    #      0.5 * ((c + t)^2 - c^2 - t^2) == c * t identically.
    second_v = (city * typ).astype(bf16)

    # ---- Deep MLP on concat([city, type], -1); concat realized by splitting
    #      layer-0 weights row-wise. MXU operands bf16, f32 accumulation,
    #      elementwise bias/ReLU in f32.
    h = (jnp.dot(city.astype(bf16), wd0a_ref[...], preferred_element_type=f32)
         + jnp.dot(typ.astype(bf16), wd0b_ref[...], preferred_element_type=f32)
         + bd0_ref[...])
    h = jnp.maximum(h, 0.0).astype(bf16)
    h = jnp.maximum(
        jnp.dot(h, wd1_ref[...], preferred_element_type=f32) + bd1_ref[...], 0.0
    ).astype(bf16)
    h = jnp.maximum(
        jnp.dot(h, wd2_ref[...], preferred_element_type=f32) + bd2_ref[...], 0.0
    ).astype(bf16)

    # ---- fused fc head on concat([first_v, second_v, deep_v], -1):
    #      merged weight sliced with static sublane-aligned views.
    fm = (jnp.dot(first_x_ref[...].astype(bf16), whead_ref[0:k1, :],
                  preferred_element_type=f32)
          + jnp.dot(second_v, whead_ref[k1:k1 + k2, :],
                    preferred_element_type=f32)
          + jnp.dot(h, whead_ref[k1 + k2:kh, :],
                    preferred_element_type=f32)
          + bfc_ref[...])

    out_ref[...] = fm.astype(out_ref.dtype)


# ---------------------------------------------------------------------------
# Parameters: raw (mirrors the PyTorch module) + one-time fusion / packing prep.
# ---------------------------------------------------------------------------
def make_params(key, embedding_size, ca_feat_size):
    E = embedding_size

    def uniform(k, shape, scale):
        return jax.random.uniform(k, shape, jnp.float32, -scale, scale)

    keys = jax.random.split(key, 16)
    params = {}
    # firt_linear: Linear(8, 1)   (stored as [in, out] for x @ W)
    params["w1"] = uniform(keys[0], (8, 1), 1.0 / jnp.sqrt(8.0))
    params["b1"] = uniform(keys[1], (1, 1), 1.0 / jnp.sqrt(8.0))
    # embedding tables (xavier-uniform-ish)
    params["emb_city"] = uniform(keys[2], (ca_feat_size[0], E),
                                 jnp.sqrt(6.0 / (ca_feat_size[0] + E)))
    params["emb_type"] = uniform(keys[3], (ca_feat_size[1], E),
                                 jnp.sqrt(6.0 / (ca_feat_size[1] + E)))
    # Deep(2E -> E): Linear(2E,2E) x3 + Linear(2E,E)
    s2e = 1.0 / jnp.sqrt(2.0 * E)
    params["wd0"] = uniform(keys[4], (2 * E, 2 * E), s2e)
    params["bd0"] = uniform(keys[5], (1, 2 * E), s2e)
    params["wd1"] = uniform(keys[6], (2 * E, 2 * E), s2e)
    params["bd1"] = uniform(keys[7], (1, 2 * E), s2e)
    params["wd2"] = uniform(keys[8], (2 * E, 2 * E), s2e)
    params["bd2"] = uniform(keys[9], (1, 2 * E), s2e)
    params["wd3"] = uniform(keys[10], (2 * E, E), s2e)
    params["bd3"] = uniform(keys[11], (1, E), s2e)
    # fc: Linear(2E + 1, E)   split row-wise: [first_v | second_v | deep_v]
    sfc = 1.0 / jnp.sqrt(2.0 * E + 1.0)
    params["wfc_f"] = uniform(keys[12], (1, E), sfc)
    params["wfc_s"] = uniform(keys[13], (E, E), sfc)
    params["wfc_d"] = uniform(keys[14], (E, E), sfc)
    params["bfc"] = uniform(keys[15], (1, E), sfc)
    return params


def _block_diag(w, n):
    r, c = w.shape
    out = jnp.zeros((n * r, n * c), w.dtype)
    for i in range(n):
        out = out.at[i * r:(i + 1) * r, i * c:(i + 1) * c].set(w)
    return out


def fuse_params(params, embedding_size, pack=PACK):
    """One-time static weight prep: head folding + lane-packing block diagonals."""
    E = embedding_size
    bd = lambda w: _block_diag(w, pack)
    tile = lambda b: jnp.tile(b, (1, pack))

    w1fc = params["w1"] @ params["wfc_f"]                      # [8, E]
    wd3fc = params["wd3"] @ params["wfc_d"]                    # [2E, E]
    # fused bias: bfc + b1*wfc_f + bd3 @ wfc_d
    bfc = (params["bfc"]
           + params["b1"] @ params["wfc_f"]
           + params["bd3"] @ params["wfc_d"])                  # [1, E]

    return {
        "emb_city": params["emb_city"],
        "emb_type": params["emb_type"],
        # deep layer 0 split over the two concat halves, block-diag lane-packed
        "wd0a": bd(params["wd0"][:E, :]).astype(jnp.bfloat16),   # [P*E, P*2E]
        "wd0b": bd(params["wd0"][E:, :]).astype(jnp.bfloat16),   # [P*E, P*2E]
        "bd0": tile(params["bd0"]),                              # [1, P*2E]
        "wd1": bd(params["wd1"]).astype(jnp.bfloat16),           # [P*2E, P*2E]
        "bd1": tile(params["bd1"]),
        "wd2": bd(params["wd2"]).astype(jnp.bfloat16),           # [P*2E, P*2E]
        "bd2": tile(params["bd2"]),
        # merged fc head weights: rows = [w1@wfc_f | wfc_s | wd3@wfc_d]
        "whead": jnp.concatenate(
            [bd(w1fc), bd(params["wfc_s"]), bd(wd3fc)], axis=0
        ).astype(jnp.bfloat16),                                  # [P*(8+3E), P*E]
        "bfc": tile(bfc),                                        # [1, P*E]
    }


# ---------------------------------------------------------------------------
# Forward: glue (column select + embedding gather + packing) + pallas_call.
# ---------------------------------------------------------------------------
_MAX_TB = 1024  # packed rows per grid step (== PACK * 1024 original batch rows)


def _pick_batch_tile(bp):
    # bp = packed batch rows. Large tiles amortize the ~0.35us per-grid-step
    # overhead; keep >= 2 grid steps when bp allows it so the "parallel" batch
    # axis can shard across v7x's two TensorCores. Grid is cdiv-based; a padded
    # last block is legal because tiles are multiples of 8.
    if bp > 2 * _MAX_TB:
        return _MAX_TB
    if bp >= 16:
        return max(8, ((bp + 15) // 16) * 8)   # ~bp/2 rounded up to multiple of 8
    return bp                                   # tiny batch: single full-dim block


@jax.jit
def jobfm_forward(fused, co_xi, co_xv, ca_xi, ca_xv):
    del co_xi  # unused by the PyTorch forward as well
    E = fused["emb_city"].shape[1]
    B = co_xv.shape[0]

    jobco = jnp.array([0, 2, 4, 6, 9, 10], dtype=jnp.int32)
    jobca = jnp.array([4, 13], dtype=jnp.int32)

    # glue: column selection + embedding gathers (plain JAX, fused by jit)
    first_x = jnp.concatenate(
        [co_xv[:, jobco].astype(jnp.float32), ca_xv[:, jobca].astype(jnp.float32)],
        axis=1)                                                   # [B, 8]
    city = jnp.take(fused["emb_city"], ca_xi[:, 4], axis=0)       # [B, E]
    typ = jnp.take(fused["emb_type"], ca_xi[:, 13], axis=0)       # [B, E]

    # lane-pack PACK batch rows per packed row (free row-major reshapes)
    b_pad = ((B + PACK - 1) // PACK) * PACK
    if b_pad != B:
        pad = ((0, b_pad - B), (0, 0))
        first_x = jnp.pad(first_x, pad)
        city = jnp.pad(city, pad)
        typ = jnp.pad(typ, pad)
    bp = b_pad // PACK
    first_x = first_x.reshape(bp, PACK * 8)
    city = city.reshape(bp, PACK * E)
    typ = typ.reshape(bp, PACK * E)

    p8, pe, p2e = PACK * 8, PACK * E, 2 * PACK * E
    kh = p8 + pe + p2e

    tb = _pick_batch_tile(bp)
    grid = (pl.cdiv(bp, tb),)

    bmap = lambda i: (i, 0)
    cmap = lambda i: (0, 0)

    in_specs = [
        pl.BlockSpec((tb, p8), bmap),        # first_x (packed)
        pl.BlockSpec((tb, pe), bmap),        # city    (packed)
        pl.BlockSpec((tb, pe), bmap),        # type    (packed)
        pl.BlockSpec((pe, p2e), cmap),       # wd0a
        pl.BlockSpec((pe, p2e), cmap),       # wd0b
        pl.BlockSpec((1, p2e), cmap),        # bd0
        pl.BlockSpec((p2e, p2e), cmap),      # wd1
        pl.BlockSpec((1, p2e), cmap),        # bd1
        pl.BlockSpec((p2e, p2e), cmap),      # wd2
        pl.BlockSpec((1, p2e), cmap),        # bd2
        pl.BlockSpec((kh, pe), cmap),        # whead = [w1fc | wfc_s | wd3fc]
        pl.BlockSpec((1, pe), cmap),         # bfc (fully folded head bias)
    ]
    out_specs = pl.BlockSpec((tb, pe), bmap)

    # advisory cost: 2*B*(8E + 15E^2) matmul flops; activation + weight traffic
    flops = 2 * B * (8 * E + 15 * E * E)
    bytes_accessed = (B * (8 + 3 * E) * 4
                      + (2 * pe * p2e + 2 * p2e * p2e + kh * pe) * 2
                      + 4 * p2e * 4)

    out_packed = pl.pallas_call(
        jobfm_kernel,
        out_shape=jax.ShapeDtypeStruct((bp, pe), jnp.float32),
        grid=grid,
        in_specs=in_specs,
        out_specs=out_specs,
        compiler_params=pltpu.CompilerParams(
            dimension_semantics=("parallel",)),
        cost_estimate=pl.CostEstimate(
            flops=flops, transcendentals=0, bytes_accessed=bytes_accessed),
    )(
        first_x, city, typ,
        fused["wd0a"], fused["wd0b"], fused["bd0"],
        fused["wd1"], fused["bd1"],
        fused["wd2"], fused["bd2"],
        fused["whead"], fused["bfc"],
    )
    return out_packed.reshape(b_pad, E)[:B]


# ---------------------------------------------------------------------------
# Pure-JAX reference (mirrors the PyTorch forward, unfused f32 weights).
# ---------------------------------------------------------------------------
def jobfm_reference(params, co_xi, co_xv, ca_xi, ca_xv, embedding_size):
    del co_xi
    jobco = jnp.array([0, 2, 4, 6, 9, 10], dtype=jnp.int32)
    jobca = jnp.array([4, 13], dtype=jnp.int32)
    hp = jax.lax.Precision.HIGHEST

    first_x = jnp.concatenate(
        [co_xv[:, jobco].astype(jnp.float32), ca_xv[:, jobca].astype(jnp.float32)],
        axis=1)
    first_v = jnp.dot(first_x, params["w1"], precision=hp) + params["b1"]

    city = jnp.take(params["emb_city"], ca_xi[:, 4], axis=0)
    typ = jnp.take(params["emb_type"], ca_xi[:, 13], axis=0)
    summed = city + typ
    second_v = 0.5 * (summed * summed - (city * city + typ * typ))

    y_deep = jnp.concatenate([city, typ], axis=1)
    h = jnp.maximum(jnp.dot(y_deep, params["wd0"], precision=hp) + params["bd0"], 0.0)
    h = jnp.maximum(jnp.dot(h, params["wd1"], precision=hp) + params["bd1"], 0.0)
    h = jnp.maximum(jnp.dot(h, params["wd2"], precision=hp) + params["bd2"], 0.0)
    deep_v = jnp.dot(h, params["wd3"], precision=hp) + params["bd3"]

    concat_w = jnp.concatenate(
        [params["wfc_f"], params["wfc_s"], params["wfc_d"]], axis=0)  # [2E+1, E]
    concat_in = jnp.concatenate([first_v, second_v, deep_v], axis=1)  # [B, 2E+1]
    return jnp.dot(concat_in, concat_w, precision=hp) + params["bfc"]


if __name__ == "__main__":
    B = 8                 # batch
    E = 32                # config.embedding_size
    CA_FEAT = [50, 10]    # [len(city dict), len(type dict)] (synthetic get_cat_size)
    # TODO(synk): get_cat_size() reads a feature2idx file in PyTorch; sizes are synthetic here.

    key = jax.random.PRNGKey(0)
    k_co_xi, k_co_xv, k_ca_xi_c, k_ca_xi_t, k_ca_xv, k_params = jax.random.split(key, 6)

    # PyTorch forward indexes co_xv up to col 10 and ca_xv/ca_xi up to col 13.
    co_xi = jax.random.randint(k_co_xi, (B, 11), 0, 5, dtype=jnp.int32)   # unused
    co_xv = jax.random.normal(k_co_xv, (B, 11), dtype=jnp.float32)
    ca_xv = jax.random.normal(k_ca_xv, (B, 14), dtype=jnp.float32)
    ca_xi = jax.random.randint(k_ca_xi_t, (B, 14), 0, CA_FEAT[1], dtype=jnp.int32)
    ca_xi = ca_xi.at[:, 4].set(
        jax.random.randint(k_ca_xi_c, (B,), 0, CA_FEAT[0], dtype=jnp.int32))

    params = make_params(k_params, E, CA_FEAT)
    fused = fuse_params(params, E)          # one-time static weight prep (packing + folds)

    out = jobfm_forward(fused, co_xi, co_xv, ca_xi, ca_xv)
    out = jax.block_until_ready(out)
    assert out.shape == (B, E) and out.dtype == jnp.float32

    ref = jobfm_reference(params, co_xi, co_xv, ca_xi, ca_xv, E)
    # bf16 MXU operands (f32 accumulation) -> slightly looser tolerance vs f32 ref.
    assert jnp.allclose(out, ref, rtol=2e-2, atol=2e-2), \
        float(jnp.max(jnp.abs(out - ref)))

    print("KERNEL_OK")
</pallas_src>

<mosaic_0001>
module attributes {stable_mosaic.version = 11 : i64} {
  func.func @jobfm_kernel(%arg0: i32, %arg1: memref<2x32xf32, #tpu.memory_space<vmem>>, %arg2: memref<2x128xf32, #tpu.memory_space<vmem>>, %arg3: memref<2x128xf32, #tpu.memory_space<vmem>>, %arg4: memref<128x256xbf16, #tpu.memory_space<vmem>>, %arg5: memref<128x256xbf16, #tpu.memory_space<vmem>>, %arg6: memref<1x256xf32, #tpu.memory_space<vmem>>, %arg7: memref<256x256xbf16, #tpu.memory_space<vmem>>, %arg8: memref<1x256xf32, #tpu.memory_space<vmem>>, %arg9: memref<256x256xbf16, #tpu.memory_space<vmem>>, %arg10: memref<1x256xf32, #tpu.memory_space<vmem>>, %arg11: memref<416x128xbf16, #tpu.memory_space<vmem>>, %arg12: memref<1x128xf32, #tpu.memory_space<vmem>>, %arg13: memref<2x128xf32, #tpu.memory_space<vmem>>) attributes {dimension_semantics = [#tpu.dimension_semantics<parallel>], iteration_bounds = array<i64: 1>, scalar_prefetch = 0 : i64, scratch_operands = 0 : i64, tpu.core_type = #tpu.core_type<tc>, window_params = [{transform_indices = @transform_0, window_bounds = array<i64: 2, 32>}, {transform_indices = @transform_1, window_bounds = array<i64: 2, 128>}, {transform_indices = @transform_2, window_bounds = array<i64: 2, 128>}, {pipeline_mode = #tpu.pipeline_mode<synchronous>, transform_indices = @transform_3, window_bounds = array<i64: 128, 256>}, {pipeline_mode = #tpu.pipeline_mode<synchronous>, transform_indices = @transform_4, window_bounds = array<i64: 128, 256>}, {pipeline_mode = #tpu.pipeline_mode<synchronous>, transform_indices = @transform_5, window_bounds = array<i64: 1, 256>}, {pipeline_mode = #tpu.pipeline_mode<synchronous>, transform_indices = @transform_6, window_bounds = array<i64: 256, 256>}, {pipeline_mode = #tpu.pipeline_mode<synchronous>, transform_indices = @transform_7, window_bounds = array<i64: 1, 256>}, {pipeline_mode = #tpu.pipeline_mode<synchronous>, transform_indices = @transform_8, window_bounds = array<i64: 256, 256>}, {pipeline_mode = #tpu.pipeline_mode<synchronous>, transform_indices = @transform_9, window_bounds = array<i64: 1, 256>}, {pipeline_mode = #tpu.pipeline_mode<synchronous>, transform_indices = @transform_10, window_bounds = array<i64: 416, 128>}, {pipeline_mode = #tpu.pipeline_mode<synchronous>, transform_indices = @transform_11, window_bounds = array<i64: 1, 128>}, {transform_indices = @transform_12, window_bounds = array<i64: 2, 128>}]} {
    %c0 = arith.constant 0 : index
    %c0_0 = arith.constant 0 : index
    %0 = vector.load %arg2[%c0, %c0_0] : memref<2x128xf32, #tpu.memory_space<vmem>>, vector<2x128xf32>
    %c0_1 = arith.constant 0 : index
    %c0_2 = arith.constant 0 : index
    %1 = vector.load %arg3[%c0_1, %c0_2] : memref<2x128xf32, #tpu.memory_space<vmem>>, vector<2x128xf32>
    %2 = arith.mulf %0, %1 : vector<2x128xf32>
    %3 = arith.truncf %2 : vector<2x128xf32> to vector<2x128xbf16>
    %4 = arith.truncf %0 : vector<2x128xf32> to vector<2x128xbf16>
    %c0_3 = arith.constant 0 : index
    %c0_4 = arith.constant 0 : index
    %5 = vector.load %arg4[%c0_3, %c0_4] : memref<128x256xbf16, #tpu.memory_space<vmem>>, vector<128x256xbf16>
    %cst = arith.constant dense<0.000000e+00> : vector<2x256xf32>
    %6 = tpu.matmul %4, %5, %cst {dimension_numbers = #tpu.dot_dimension_numbers<[1], [0], [0], [1], [0, 0, 1, 1], [], []>} : vector<2x128xbf16>, vector<128x256xbf16>, vector<2x256xf32> -> vector<2x256xf32>
    %7 = arith.truncf %1 : vector<2x128xf32> to vector<2x128xbf16>
    %c0_5 = arith.constant 0 : index
    %c0_6 = arith.constant 0 : index
    %8 = vector.load %arg5[%c0_5, %c0_6] : memref<128x256xbf16, #tpu.memory_space<vmem>>, vector<128x256xbf16>
    %cst_7 = arith.constant dense<0.000000e+00> : vector<2x256xf32>
    %9 = tpu.matmul %7, %8, %cst_7 {dimension_numbers = #tpu.dot_dimension_numbers<[1], [0], [0], [1], [0, 0, 1, 1], [], []>} : vector<2x128xbf16>, vector<128x256xbf16>, vector<2x256xf32> -> vector<2x256xf32>
    %10 = arith.addf %6, %9 : vector<2x256xf32>
    %c0_8 = arith.constant 0 : index
    %c0_9 = arith.constant 0 : index
    %11 = vector.load %arg6[%c0_8, %c0_9] : memref<1x256xf32, #tpu.memory_space<vmem>>, vector<1x256xf32>
    %12 = vector.broadcast %11 : vector<1x256xf32> to vector<2x256xf32>
    %13 = arith.addf %10, %12 : vector<2x256xf32>
    %cst_10 = arith.constant 0.000000e+00 : f32
    %14 = vector.broadcast %cst_10 : f32 to vector<2x256xf32>
    %15 = arith.maximumf %13, %14 : vector<2x256xf32>
    %16 = arith.truncf %15 : vector<2x256xf32> to vector<2x256xbf16>
    %c0_11 = arith.constant 0 : index
    %c0_12 = arith.constant 0 : index
    %17 = vector.load %arg7[%c0_11, %c0_12] : memref<256x256xbf16, #tpu.memory_space<vmem>>, vector<256x256xbf16>
    %cst_13 = arith.constant dense<0.000000e+00> : vector<2x256xf32>
    %18 = tpu.matmul %16, %17, %cst_13 {dimension_numbers = #tpu.dot_dimension_numbers<[1], [0], [0], [1], [0, 0, 1, 1], [], []>} : vector<2x256xbf16>, vector<256x256xbf16>, vector<2x256xf32> -> vector<2x256xf32>
    %c0_14 = arith.constant 0 : index
    %c0_15 = arith.constant 0 : index
    %19 = vector.load %arg8[%c0_14, %c0_15] : memref<1x256xf32, #tpu.memory_space<vmem>>, vector<1x256xf32>
    %20 = vector.broadcast %19 : vector<1x256xf32> to vector<2x256xf32>
    %21 = arith.addf %18, %20 : vector<2x256xf32>
    %cst_16 = arith.constant 0.000000e+00 : f32
    %22 = vector.broadcast %cst_16 : f32 to vector<2x256xf32>
    %23 = arith.maximumf %21, %22 : vector<2x256xf32>
    %24 = arith.truncf %23 : vector<2x256xf32> to vector<2x256xbf16>
    %c0_17 = arith.constant 0 : index
    %c0_18 = arith.constant 0 : index
    %25 = vector.load %arg9[%c0_17, %c0_18] : memref<256x256xbf16, #tpu.memory_space<vmem>>, vector<256x256xbf16>
    %cst_19 = arith.constant dense<0.000000e+00> : vector<2x256xf32>
    %26 = tpu.matmul %24, %25, %cst_19 {dimension_numbers = #tpu.dot_dimension_numbers<[1], [0], [0], [1], [0, 0, 1, 1], [], []>} : vector<2x256xbf16>, vector<256x256xbf16>, vector<2x256xf32> -> vector<2x256xf32>
    %c0_20 = arith.constant 0 : index
    %c0_21 = arith.constant 0 : index
    %27 = vector.load %arg10[%c0_20, %c0_21] : memref<1x256xf32, #tpu.memory_space<vmem>>, vector<1x256xf32>
    %28 = vector.broadcast %27 : vector<1x256xf32> to vector<2x256xf32>
    %29 = arith.addf %26, %28 : vector<2x256xf32>
    %cst_22 = arith.constant 0.000000e+00 : f32
    %30 = vector.broadcast %cst_22 : f32 to vector<2x256xf32>
    %31 = arith.maximumf %29, %30 : vector<2x256xf32>
    %32 = arith.truncf %31 : vector<2x256xf32> to vector<2x256xbf16>
    %c0_23 = arith.constant 0 : index
    %c0_24 = arith.constant 0 : index
    %33 = vector.load %arg1[%c0_23, %c0_24] : memref<2x32xf32, #tpu.memory_space<vmem>>, vector<2x32xf32>
    %34 = arith.truncf %33 : vector<2x32xf32> to vector<2x32xbf16>
    %c0_25 = arith.constant 0 : index
    %c0_26 = arith.constant 0 : index
    %35 = vector.load %arg11[%c0_25, %c0_26] : memref<416x128xbf16, #tpu.memory_space<vmem>>, vector<32x128xbf16>
    %cst_27 = arith.constant dense<0.000000e+00> : vector<2x128xf32>
    %36 = tpu.matmul %34, %35, %cst_27 {dimension_numbers = #tpu.dot_dimension_numbers<[1], [0], [0], [1], [0, 0, 1, 1], [], []>} : vector<2x32xbf16>, vector<32x128xbf16>, vector<2x128xf32> -> vector<2x128xf32>
    %c32 = arith.constant 32 : index
    %c0_28 = arith.constant 0 : index
    %37 = vector.load %arg11[%c32, %c0_28] : memref<416x128xbf16, #tpu.memory_space<vmem>>, vector<128x128xbf16>
    %cst_29 = arith.constant dense<0.000000e+00> : vector<2x128xf32>
    %38 = tpu.matmul %3, %37, %cst_29 {dimension_numbers = #tpu.dot_dimension_numbers<[1], [0], [0], [1], [0, 0, 1, 1], [], []>} : vector<2x128xbf16>, vector<128x128xbf16>, vector<2x128xf32> -> vector<2x128xf32>
    %39 = arith.addf %36, %38 : vector<2x128xf32>
    %c160 = arith.constant 160 : index
    %c0_30 = arith.constant 0 : index
    %40 = vector.load %arg11[%c160, %c0_30] : memref<416x128xbf16, #tpu.memory_space<vmem>>, vector<256x128xbf16>
    %cst_31 = arith.constant dense<0.000000e+00> : vector<2x128xf32>
    %41 = tpu.matmul %32, %40, %cst_31 {dimension_numbers = #tpu.dot_dimension_numbers<[1], [0], [0], [1], [0, 0, 1, 1], [], []>} : vector<2x256xbf16>, vector<256x128xbf16>, vector<2x128xf32> -> vector<2x128xf32>
    %42 = arith.addf %39, %41 : vector<2x128xf32>
    %c0_32 = arith.constant 0 : index
    %c0_33 = arith.constant 0 : index
    %43 = vector.load %arg12[%c0_32, %c0_33] : memref<1x128xf32, #tpu.memory_space<vmem>>, vector<1x128xf32>
    %44 = vector.broadcast %43 : vector<1x128xf32> to vector<2x128xf32>
    %45 = arith.addf %42, %44 : vector<2x128xf32>
    %c0_34 = arith.constant 0 : index
    %c0_35 = arith.constant 0 : index
    %46 = vector.load %arg13[%c0_34, %c0_35] : memref<2x128xf32, #tpu.memory_space<vmem>>, vector<2x128xf32>
    tpu.vector_store %arg13[%c0_34, %c0_35], %45 {strides = array<i32>} : memref<2x128xf32, #tpu.memory_space<vmem>>, vector<2x128xf32>,
    return
  }
  func.func @transform_0(%arg0: i32) -> (i32, i32) {
    %c0_i32 = arith.constant 0 : i32
    %c0_i32_0 = arith.constant 0 : i32
    return %arg0, %c0_i32 : i32, i32
  }
  func.func @transform_1(%arg0: i32) -> (i32, i32) {
    %c0_i32 = arith.constant 0 : i32
    %c0_i32_0 = arith.constant 0 : i32
    return %arg0, %c0_i32 : i32, i32
  }
  func.func @transform_2(%arg0: i32) -> (i32, i32) {
    %c0_i32 = arith.constant 0 : i32
    %c0_i32_0 = arith.constant 0 : i32
    return %arg0, %c0_i32 : i32, i32
  }
  func.func @transform_3(%arg0: i32) -> (i32, i32) {
    %c0_i32 = arith.constant 0 : i32
    %c0_i32_0 = arith.constant 0 : i32
    %c0_i32_1 = arith.constant 0 : i32
    return %c0_i32, %c0_i32_0 : i32, i32
  }
  func.func @transform_4(%arg0: i32) -> (i32, i32) {
    %c0_i32 = arith.constant 0 : i32
    %c0_i32_0 = arith.constant 0 : i32
    %c0_i32_1 = arith.constant 0 : i32
    return %c0_i32, %c0_i32_0 : i32, i32
  }
  func.func @transform_5(%arg0: i32) -> (i32, i32) {
    %c0_i32 = arith.constant 0 : i32
    %c0_i32_0 = arith.constant 0 : i32
    %c0_i32_1 = arith.constant 0 : i32
    return %c0_i32, %c0_i32_0 : i32, i32
  }
  func.func @transform_6(%arg0: i32) -> (i32, i32) {
    %c0_i32 = arith.constant 0 : i32
    %c0_i32_0 = arith.constant 0 : i32
    %c0_i32_1 = arith.constant 0 : i32
    return %c0_i32, %c0_i32_0 : i32, i32
  }
  func.func @transform_7(%arg0: i32) -> (i32, i32) {
    %c0_i32 = arith.constant 0 : i32
    %c0_i32_0 = arith.constant 0 : i32
    %c0_i32_1 = arith.constant 0 : i32
    return %c0_i32, %c0_i32_0 : i32, i32
  }
  func.func @transform_8(%arg0: i32) -> (i32, i32) {
    %c0_i32 = arith.constant 0 : i32
    %c0_i32_0 = arith.constant 0 : i32
    %c0_i32_1 = arith.constant 0 : i32
    return %c0_i32, %c0_i32_0 : i32, i32
  }
  func.func @transform_9(%arg0: i32) -> (i32, i32) {
    %c0_i32 = arith.constant 0 : i32
    %c0_i32_0 = arith.constant 0 : i32
    %c0_i32_1 = arith.constant 0 : i32
    return %c0_i32, %c0_i32_0 : i32, i32
  }
  func.func @transform_10(%arg0: i32) -> (i32, i32) {
    %c0_i32 = arith.constant 0 : i32
    %c0_i32_0 = arith.constant 0 : i32
    %c0_i32_1 = arith.constant 0 : i32
    return %c0_i32, %c0_i32_0 : i32, i32
  }
  func.func @transform_11(%arg0: i32) -> (i32, i32) {
    %c0_i32 = arith.constant 0 : i32
    %c0_i32_0 = arith.constant 0 : i32
    %c0_i32_1 = arith.constant 0 : i32
    return %c0_i32, %c0_i32_0 : i32, i32
  }
  func.func @transform_12(%arg0: i32) -> (i32, i32) {
    %c0_i32 = arith.constant 0 : i32
    %c0_i32_0 = arith.constant 0 : i32
    return %arg0, %c0_i32 : i32, i32
  }
}

</mosaic_0001>

<bundles_post_ra>
// kernel: jobfm_forward.1
= control target key start
LH: loop header
LB: loop body
LE: loop exit
PB: predicated region body
PF: predicated region fallthrough
CT: control target
= control target key end

     0   :  { %17 = vsyncpa [#allocation3], 0  ;;  %s2191_s0 = inlined_call_operand.vmem [shape: f32[2,32], index: 0, kind: input, shape index: {}]   ;;  %s2192_s1 = inlined_call_operand.vmem [shape: f32[2,128], index: 1, kind: input, shape index: {}]   ;;  %s2193_s2 = inlined_call_operand.vmem [shape: f32[2,128], index: 2, kind: input, shape index: {}]   ;;  %s2194_s3 = inlined_call_operand.vmem [shape: bf16[128,256], index: 3, kind: input, shape index: {}]   ;;  %s2195_s4 = inlined_call_operand.hbm [shape: bf16[128,256], index: 4, kind: input, shape index: {}]   ;;  %s2196_s5 = inlined_call_operand.hbm [shape: f32[1,256], index: 5, kind: input, shape index: {}]   ;;  %s2197_s6 = inlined_call_operand.vmem [shape: bf16[256,256], index: 6, kind: input, shape index: {}]   ;;  %s2198_s7 = inlined_call_operand.hbm [shape: f32[1,256], index: 7, kind: input, shape index: {}]   ;;  %s2199_s8 = inlined_call_operand.vmem [shape: bf16[256,256], index: 8, kind: input, shape index: {}]   ;;  %s2200_s9 = inlined_call_operand.hbm [shape: f32[1,256], index: 9, kind: input, shape index: {}]   ;;  %s2201_s10 = inlined_call_operand.hbm [shape: bf16[416,128], index: 10, kind: input, shape index: {}]   ;;  %s2202_s11 = inlined_call_operand.hbm [shape: f32[1,128], index: 11, kind: input, shape index: {}]   ;;  %s2203_s12 = inlined_call_operand.vmem [shape: f32[2,128], index: 12, kind: output, shape index: {}]  }
   0x1   :  { %18 = vsyncpa [#allocation5], 0 }
   0x2   :  { %19 = vsyncpa [#allocation8], 0 }
   0x3   :  { %20 = vsyncpa [#allocation11], 0  ;;  %s1773_s21 = smov [#allocation4]   ;;  %s1774_s23 = smov [#allocation7]  }
   0x4   :  { %s47_s22 = sshll.u32 %s1773_s21, 4  ;;  %s71_s24 = sshll.u32 %s1774_s23, 4  ;;  %s48_s22 = int_to_ptr.vmem [resolvable:$true] %s47_s22  ;;  %s72_s24 = int_to_ptr.vmem [resolvable:$true] %s71_s24 }
   0x5   :  { %s1633_s27 = scalar_lea.hbm %s2196_s5, 32 }
   0x6   :  { %p1634_p0 = scmp.ne.s32.totalorder %s2196_s5, %s1633_s27  ;;  %p1637_p1 = scmp.lt.u32.totalorder %s1633_s27, %s2196_s5 }
   0x8   :  { %p1639_p2 = pnand %p1637_p1, %p1634_p0 }
   0xa   :  { %1642 = shalt.err (!%p1639_p2)
}
   0xb   :  { %s1643_s14 = scalar_lea.vmem %s48_s22, 32  ;;  %p1648_p4 = scmp.lt.s32.totalorder %s48_s22, %s48_s22 }
   0xc   :  { %p1644_p3 = scmp.ne.s32.totalorder %s48_s22, %s1643_s14  ;;  %p1649_p5 = scmp.lt.s32.totalorder %s1643_s14, %s1643_s14 }
   0xe   :  { %p1650_p6 = por %p1649_p5, %p1648_p4 }
  0x10   :  { %p1651_p7 = pnand %p1650_p6, %p1644_p3 }
  0x12   :  { %1654 = shalt.err (!%p1651_p7)
}
  0x13   :  { %50 = dma.hbm_to_vmem [thread:$0]  %s2196_s5, 32, %s48_s22, [#allocation5]  }
  0x14   :  { %s1655_s19 = scalar_lea.hbm %s2200_s9, 32 }
  0x15   :  { %p1656_p8 = scmp.ne.s32.totalorder %s2200_s9, %s1655_s19  ;;  %p1659_p9 = scmp.lt.u32.totalorder %s1655_s19, %s2200_s9 }
  0x17   :  { %p1661_p10 = pnand %p1659_p9, %p1656_p8 }
  0x19   :  { %1664 = shalt.err (!%p1661_p10)
}
  0x1a   :  { %s1665_s26 = scalar_lea.vmem %s72_s24, 32  ;;  %p1670_p12 = scmp.lt.s32.totalorder %s72_s24, %s72_s24 }
  0x1b   :  { %p1666_p11 = scmp.ne.s32.totalorder %s72_s24, %s1665_s26  ;;  %p1671_p13 = scmp.lt.s32.totalorder %s1665_s26, %s1665_s26 }
  0x1d   :  { %p1672_p0 = por %p1671_p13, %p1670_p12 }
  0x1f   :  { %p1673_p1 = pnand %p1672_p0, %p1666_p11 }
  0x21   :  { %1676 = shalt.err (!%p1673_p1)
}
  0x22   :  { %74 = dma.hbm_to_vmem [thread:$0]  %s2200_s9, 32, %s72_s24, [#allocation8]  }
  0x23   :  { %s1775_s27 = smov [#allocation2]   ;;  %s1677_s13 = scalar_lea.hbm %s2195_s4, 2048 }
  0x24   :  { %s34_s28 = sshll.u32 %s1775_s27, 4  ;;  %p1678_p2 = scmp.ne.s32.totalorder %s2195_s4, %s1677_s13  ;;  %s35_s28 = int_to_ptr.vmem [resolvable:$true] %s34_s28 }
  0x25   :  { %p1681_p3 = scmp.lt.u32.totalorder %s1677_s13, %s2195_s4 }
  0x27   :  { %p1683_p4 = pnand %p1681_p3, %p1678_p2 }
  0x29   :  { %1686 = shalt.err (!%p1683_p4)
}
  0x2a   :  { %s1687_s18 = scalar_lea.vmem %s35_s28, 2048  ;;  %p1692_p6 = scmp.lt.s32.totalorder %s35_s28, %s35_s28 }
  0x2b   :  { %p1688_p5 = scmp.ne.s32.totalorder %s35_s28, %s1687_s18  ;;  %p1693_p7 = scmp.lt.s32.totalorder %s1687_s18, %s1687_s18 }
  0x2d   :  { %p1694_p8 = por %p1693_p7, %p1692_p6 }
  0x2f   :  { %p1695_p9 = pnand %p1694_p8, %p1688_p5 }
  0x31   :  { %1698 = shalt.err (!%p1695_p9)
}
  0x32   :  { %s1776_s9 = smov 128   ;;  %s1777_s24 = smov 8  }
  0x33   :  { %40 = dma.hbm_to_vmem [thread:$0]  %s2195_s4, 2048, %s35_s28, [#allocation3], %s1776_s9, %s1776_s9, %s1777_s24  }
  0x34   :  { %s1778_s21 = smov [#allocation6]   ;;  %s1779_s25 = smov [#allocation9]  }
  0x35   :  { %s59_s23 = sshll.u32 %s1778_s21, 4  ;;  %s80_s26 = sshll.u32 %s1779_s25, 4  ;;  %s60_s23 = int_to_ptr.vmem [resolvable:$true] %s59_s23  ;;  %s81_s26 = int_to_ptr.vmem [resolvable:$true] %s80_s26 }
  0x36   :  { %s1699_s27 = scalar_lea.hbm %s2198_s7, 32 }
  0x37   :  { %p1700_p10 = scmp.ne.s32.totalorder %s2198_s7, %s1699_s27  ;;  %p1703_p11 = scmp.lt.u32.totalorder %s1699_s27, %s2198_s7 }
  0x39   :  { %p1705_p12 = pnand %p1703_p11, %p1700_p10 }
  0x3b   :  { %1708 = shalt.err (!%p1705_p12)
}
  0x3c   :  { %s1709_s4 = scalar_lea.vmem %s60_s23, 32  ;;  %p1714_p0 = scmp.lt.s32.totalorder %s60_s23, %s60_s23 }
  0x3d   :  { %p1710_p13 = scmp.ne.s32.totalorder %s60_s23, %s1709_s4  ;;  %p1715_p1 = scmp.lt.s32.totalorder %s1709_s4, %s1709_s4 }
  0x3f   :  { %p1716_p2 = por %p1715_p1, %p1714_p0 }
  0x41   :  { %p1717_p3 = pnand %p1716_p2, %p1710_p13 }
  0x43   :  { %1720 = shalt.err (!%p1717_p3)
}
  0x44   :  { %62 = dma.hbm_to_vmem [thread:$0]  %s2198_s7, 32, %s60_s23, [#allocation5]  }
  0x45   :  { %s1721_s18 = scalar_lea.hbm %s2201_s10, 3328 }
  0x46   :  { %p1722_p4 = scmp.ne.s32.totalorder %s2201_s10, %s1721_s18  ;;  %p1725_p5 = scmp.lt.u32.totalorder %s1721_s18, %s2201_s10 }
  0x48   :  { %p1727_p6 = pnand %p1725_p5, %p1722_p4 }
  0x4a   :  { %1730 = shalt.err (!%p1727_p6)
}
  0x4b   :  { %s1731_s21 = scalar_lea.vmem %s81_s26, 3328  ;;  %p1736_p8 = scmp.lt.s32.totalorder %s81_s26, %s81_s26 }
  0x4c   :  { %p1732_p7 = scmp.ne.s32.totalorder %s81_s26, %s1731_s21  ;;  %p1737_p9 = scmp.lt.s32.totalorder %s1731_s21, %s1731_s21 }
  0x4e   :  { %p1738_p10 = por %p1737_p9, %p1736_p8 }
  0x50   :  { %p1739_p11 = pnand %p1738_p10, %p1732_p7 }
  0x52   :  { %1742 = shalt.err (!%p1739_p11)
}
  0x53   :  { %s1780_s7 = smov 64   ;;  %s1781_s23 = smov 4  }
  0x54   :  { %86 = dma.hbm_to_vmem [thread:$0]  %s2201_s10, 3328, %s81_s26, [#allocation8], %s1780_s7, %s1780_s7, %s1781_s23  }
  0x55   :  { %s1782_s22 = smov [#allocation10]   ;;  %s1743_s13 = scalar_lea.hbm %s2202_s11, 16 }
  0x56   :  { %s93_s27 = sshll.u32 %s1782_s22, 4  ;;  %p1744_p12 = scmp.ne.s32.totalorder %s2202_s11, %s1743_s13  ;;  %s94_s27 = int_to_ptr.vmem [resolvable:$true] %s93_s27 }
  0x57   :  { %p1747_p13 = scmp.lt.u32.totalorder %s1743_s13, %s2202_s11 }
  0x59   :  { %p1749_p0 = pnand %p1747_p13, %p1744_p12 }
  0x5b   :  { %1752 = shalt.err (!%p1749_p0)
}
  0x5c   :  { %s1753_s16 = scalar_lea.vmem %s94_s27, 16  ;;  %s1757_s10 = scalar_lea.vmem %s94_s27, 32 }
  0x5d   :  { %p1754_p1 = scmp.ne.s32.totalorder %s94_s27, %s1753_s16  ;;  %p1758_p2 = scmp.lt.s32.totalorder %s94_s27, %s94_s27 }
  0x5e   :  { %p1759_p3 = scmp.lt.s32.totalorder %s1757_s10, %s1753_s16 }
  0x60   :  { %p1760_p4 = por %p1759_p3, %p1758_p2 }
  0x62   :  { %p1761_p5 = pnand %p1760_p4, %p1754_p1 }
  0x64   :  { %1764 = shalt.err (!%p1761_p5)
}
  0x65   :  { %96 = dma.hbm_to_vmem [thread:$0]  %s2202_s11, 16, %s94_s27, [#allocation11]  }
  0x66   :  { %1765 = dma.done.wait [#allocation3], 2048  }
  0x67   :  { %1766 = vsyncadd [#allocation3], 4294965248 }
  0x68   :  { %1767 = dma.done.wait [#allocation5], 64  }
  0x69   :  { %1768 = vsyncadd [#allocation5], 4294967232 }
  0x6a   :  { %1769 = dma.done.wait [#allocation8], 3360  }
  0x6b   :  { %1770 = vsyncadd [#allocation8], 4294963936 }
  0x6c   :  { %1771 = dma.done.wait [#allocation11], 16  }
  0x6d   :  { %1772 = vsyncadd [#allocation11], 4294967280  ;;  %v1783_v0 = vmov 0   ;;  %v1463_v1 = vld [vmem:[#allocation2 + $0x4] ss:$8 sps:$4 sm:$0xff]   ;;  %vm1785_vm0 = vmmov 0  }
  0x6e   :  { %266 = vmatprep.mubr.bf16.mxu0 %v1783_v0  ;;  %387 = vmatprep.mubr.bf16.mxu1 %v1783_v0  ;;  %v1465_v2 = vld [vmem:[%s2194_s3 + $0x4] ss:$8 sps:$4 sm:$0xff]   ;;  %v1467_v3 = vld [vmem:[#allocation2] ss:$8 sps:$4 sm:$0xff]   ;;  %v1469_v5 = vld [vmem:[#allocation2 + $0x14] ss:$8 sps:$4 sm:$0xff]  }
  0x6f   :  { %234 = vmatprep.subr.bf16.mxu0 %v1463_v1  ;;  %v1468_v4 = vld [vmem:[%s2194_s3] ss:$8 sps:$4 sm:$0xff]   ;;  %355 = vmatprep.subr.bf16.mxu1 %v1465_v2  ;;  %v1471_v6 = vld [vmem:[%s2194_s3 + $0x14] ss:$8 sps:$4 sm:$0xff]   ;;  %v1473_v7 = vld [vmem:[#allocation2 + $0x10] ss:$8 sps:$4 sm:$0xff]  }
  0x70   :  { %235 = vmatpush1.bf16.msra.mxu0 %v1467_v3  ;;  %356 = vmatpush1.bf16.msra.mxu1 %v1468_v4  ;;  %v1474_v8 = vld [vmem:[%s2194_s3 + $0x10] ss:$8 sps:$4 sm:$0xff]   ;;  %v1475_v9 = vld [vmem:[#allocation2 + $0x24] ss:$8 sps:$4 sm:$0xff]   ;;  %v1479_v11 = vld [vmem:[#allocation2 + $0x20] ss:$8 sps:$4 sm:$0xff]  }
  0x71   :  { %236 = vmatprep.subr.bf16.mxu0 %v1469_v5  ;;  %357 = vmatprep.subr.bf16.mxu1 %v1471_v6  ;;  %v1477_v10 = vld [vmem:[%s2194_s3 + $0x24] ss:$8 sps:$4 sm:$0xff]   ;;  %v1480_v12 = vld [vmem:[%s2194_s3 + $0x20] ss:$8 sps:$4 sm:$0xff]   ;;  %v1481_v13 = vld [vmem:[#allocation2 + $0x34] ss:$8 sps:$4 sm:$0xff]  }
  0x72   :  { %v1483_v14 = vld [vmem:[%s2194_s3 + $0x34] ss:$8 sps:$4 sm:$0xff]   ;;  %v1485_v15 = vld [vmem:[#allocation2 + $0x30] ss:$8 sps:$4 sm:$0xff]   ;;  %v1487_v17 = vld [vmem:[#allocation2 + $0x44] ss:$8 sps:$4 sm:$0xff]  }
  0x73   :  { %v1486_v16 = vld [vmem:[%s2194_s3 + $0x30] ss:$8 sps:$4 sm:$0xff]   ;;  %v1489_v18 = vld [vmem:[%s2194_s3 + $0x44] ss:$8 sps:$4 sm:$0xff]   ;;  %v1491_v19 = vld [vmem:[#allocation2 + $0x40] ss:$8 sps:$4 sm:$0xff]  }
  0x74   :  { %237 = vmatpush1.bf16.msra.mxu0 %v1473_v7  ;;  %358 = vmatpush1.bf16.msra.mxu1 %v1474_v8  ;;  %v1492_v20 = vld [vmem:[%s2194_s3 + $0x40] ss:$8 sps:$4 sm:$0xff]   ;;  %v1493_v21 = vld [vmem:[#allocation2 + $0x54] ss:$8 sps:$4 sm:$0xff]   ;;  %v1497_v23 = vld [vmem:[#allocation2 + $0x50] ss:$8 sps:$4 sm:$0xff]  }
  0x75   :  { %238 = vmatprep.subr.bf16.mxu0 %v1475_v9  ;;  %359 = vmatprep.subr.bf16.mxu1 %v1477_v10  ;;  %v1495_v22 = vld [vmem:[%s2194_s3 + $0x54] ss:$8 sps:$4 sm:$0xff]   ;;  %v1498_v24 = vld [vmem:[%s2194_s3 + $0x50] ss:$8 sps:$4 sm:$0xff]   ;;  %v1499_v25 = vld [vmem:[#allocation2 + $0x64] ss:$8 sps:$4 sm:$0xff]  }
  0x76   :  { %v1501_v26 = vld [vmem:[%s2194_s3 + $0x64] ss:$8 sps:$4 sm:$0xff]   ;;  %v117_v27 = vld [vmem:[%s2193_s2] sm:$0x3]  ;;  %v1505_v32 = vld [vmem:[#allocation2 + $0x74] ss:$8 sps:$4 sm:$0xff]  }
  0x77   :  { %v116_v28 = vld [vmem:[%s2192_s1] sm:$0x3]  ;;  %v1507_v33 = vld [vmem:[%s2194_s3 + $0x74] ss:$8 sps:$4 sm:$0xff]   ;;  %v1509_v34 = vld [vmem:[#allocation2 + $0x70] ss:$8 sps:$4 sm:$0xff]   ;;  %v137_v37 = vpack.c.bf16 %v117_v27, %v117_v27 }
  0x78   :  { %239 = vmatpush1.bf16.msra.mxu0 %v1479_v11  ;;  %360 = vmatpush1.bf16.msra.mxu1 %v1480_v12  ;;  %v1968_v29 = vmul.f32 %v117_v27, %v116_v28  ;;  %v1503_v30 = vld [vmem:[#allocation2 + $0x60] ss:$8 sps:$4 sm:$0xff]   ;;  %v1510_v35 = vld [vmem:[%s2194_s3 + $0x70] ss:$8 sps:$4 sm:$0xff]   ;;  %v1513_v36 = vld [vmem:[%s2197_s6 + $0x4] ss:$8 sps:$4 sm:$0xff]   ;;  %v120_v38 = vpack.c.bf16 %v116_v28, %v116_v28 }
  0x79   :  { %240 = vmatprep.subr.bf16.mxu0 %v1481_v13  ;;  %361 = vmatprep.subr.bf16.mxu1 %v1483_v14  ;;  %v1504_v31 = vld [vmem:[%s2194_s3 + $0x60] ss:$8 sps:$4 sm:$0xff]   ;;  %v1516_v40 = vld [vmem:[%s2197_s6 + $0x14] ss:$8 sps:$4 sm:$0xff]   ;;  %v1514_v41 = vld [vmem:[%s2197_s6 + $0x10] ss:$8 sps:$4 sm:$0xff]  }
  0x7a   :  { %v1511_v39 = vld [vmem:[%s2197_s6] ss:$8 sps:$4 sm:$0xff]   ;;  %v1519_v42 = vld [vmem:[%s2197_s6 + $0x24] ss:$8 sps:$4 sm:$0xff]   ;;  %v1522_v44 = vld [vmem:[%s2197_s6 + $0x34] ss:$8 sps:$4 sm:$0xff]  }
  0x7b   :  { %v1517_v43 = vld [vmem:[%s2197_s6 + $0x20] ss:$8 sps:$4 sm:$0xff]   ;;  %v1520_v45 = vld [vmem:[%s2197_s6 + $0x30] ss:$8 sps:$4 sm:$0xff]   ;;  %v1525_v46 = vld [vmem:[%s2197_s6 + $0x44] ss:$8 sps:$4 sm:$0xff]  }
  0x7c   :  { %241 = vmatpush1.bf16.msra.mxu0 %v1485_v15  ;;  %362 = vmatpush1.bf16.msra.mxu1 %v1486_v16  ;;  %v1523_v47 = vld [vmem:[%s2197_s6 + $0x40] ss:$8 sps:$4 sm:$0xff]   ;;  %v1528_v48 = vld [vmem:[%s2197_s6 + $0x54] ss:$8 sps:$4 sm:$0xff]   ;;  %v1526_v49 = vld [vmem:[%s2197_s6 + $0x50] ss:$8 sps:$4 sm:$0xff]  }
  0x7d   :  { %242 = vmatprep.subr.bf16.mxu0 %v1487_v17  ;;  %363 = vmatprep.subr.bf16.mxu1 %v1489_v18  ;;  %v1531_v50 = vld [vmem:[%s2197_s6 + $0x64] ss:$8 sps:$4 sm:$0xff]   ;;  %v1529_v51 = vld [vmem:[%s2197_s6 + $0x60] ss:$8 sps:$4 sm:$0xff]   ;;  %v1534_v52 = vld [vmem:[%s2197_s6 + $0x74] ss:$8 sps:$4 sm:$0xff]  }
  0x7e   :  { %v1532_v53 = vld [vmem:[%s2197_s6 + $0x70] ss:$8 sps:$4 sm:$0xff]   ;;  %v1537_v54 = vld [vmem:[%s2197_s6 + $0x84] ss:$8 sps:$4 sm:$0xff]   ;;  %v1535_v55 = vld [vmem:[%s2197_s6 + $0x80] ss:$8 sps:$4 sm:$0xff]  }
  0x7f   :  { %v1540_v56 = vld [vmem:[%s2197_s6 + $0x94] ss:$8 sps:$4 sm:$0xff]   ;;  %v1538_v57 = vld [vmem:[%s2197_s6 + $0x90] ss:$8 sps:$4 sm:$0xff]   ;;  %v1543_v58 = vld [vmem:[%s2197_s6 + $0xa4] ss:$8 sps:$4 sm:$0xff]  }
  0x80   :  { %243 = vmatpush1.bf16.msra.mxu0 %v1491_v19  ;;  %364 = vmatpush1.bf16.msra.mxu1 %v1492_v20  ;;  %v1541_v59 = vld [vmem:[%s2197_s6 + $0xa0] ss:$8 sps:$4 sm:$0xff]   ;;  %v1546_v60 = vld [vmem:[%s2197_s6 + $0xb4] ss:$8 sps:$4 sm:$0xff]   ;;  %v1544_v61 = vld [vmem:[%s2197_s6 + $0xb0] ss:$8 sps:$4 sm:$0xff]  }
  0x81   :  { %244 = vmatprep.subr.bf16.mxu0 %v1493_v21  ;;  %365 = vmatprep.subr.bf16.mxu1 %v1495_v22  ;;  %v1549_v62 = vld [vmem:[%s2197_s6 + $0xc4] ss:$8 sps:$4 sm:$0xff]   ;;  %v1547_v63 = vld [vmem:[%s2197_s6 + $0xc0] ss:$8 sps:$4 sm:$0xff]   ;;  %v1552_v0 = vld [vmem:[%s2197_s6 + $0xd4] ss:$8 sps:$4 sm:$0xff]  }
  0x82   :  { %v1550_v1 = vld [vmem:[%s2197_s6 + $0xd0] ss:$8 sps:$4 sm:$0xff]   ;;  %v1555_v2 = vld [vmem:[%s2197_s6 + $0xe4] ss:$8 sps:$4 sm:$0xff]   ;;  %v1553_v3 = vld [vmem:[%s2197_s6 + $0xe0] ss:$8 sps:$4 sm:$0xff]  }
  0x83   :  { %v1558_v4 = vld [vmem:[%s2197_s6 + $0xf4] ss:$8 sps:$4 sm:$0xff]   ;;  %v1556_v5 = vld [vmem:[%s2197_s6 + $0xf0] ss:$8 sps:$4 sm:$0xff]   ;;  %v1559_v6 = vld [vmem:[%s2199_s8] ss:$8 sps:$4 sm:$0xff]  }
  0x84   :  { %245 = vmatpush1.bf16.msra.mxu0 %v1497_v23  ;;  %366 = vmatpush1.bf16.msra.mxu1 %v1498_v24  ;;  %v1561_v7 = vld [vmem:[%s2199_s8 + $0x4] ss:$8 sps:$4 sm:$0xff]   ;;  %v1564_v8 = vld [vmem:[%s2199_s8 + $0x14] ss:$8 sps:$4 sm:$0xff]   ;;  %v1562_v9 = vld [vmem:[%s2199_s8 + $0x10] ss:$8 sps:$4 sm:$0xff]  }
  0x85   :  { %246 = vmatprep.subr.bf16.mxu0 %v1499_v25  ;;  %367 = vmatprep.subr.bf16.mxu1 %v1501_v26  ;;  %v1567_v10 = vld [vmem:[%s2199_s8 + $0x24] ss:$8 sps:$4 sm:$0xff]   ;;  %v1565_v11 = vld [vmem:[%s2199_s8 + $0x20] ss:$8 sps:$4 sm:$0xff]   ;;  %v1570_v12 = vld [vmem:[%s2199_s8 + $0x34] ss:$8 sps:$4 sm:$0xff]  }
  0x86   :  { %v1568_v13 = vld [vmem:[%s2199_s8 + $0x30] ss:$8 sps:$4 sm:$0xff]   ;;  %v1573_v14 = vld [vmem:[%s2199_s8 + $0x44] ss:$8 sps:$4 sm:$0xff]   ;;  %v1571_v15 = vld [vmem:[%s2199_s8 + $0x40] ss:$8 sps:$4 sm:$0xff]  }
  0x87   :  { %v1576_v16 = vld [vmem:[%s2199_s8 + $0x54] ss:$8 sps:$4 sm:$0xff]   ;;  %v1574_v17 = vld [vmem:[%s2199_s8 + $0x50] ss:$8 sps:$4 sm:$0xff]   ;;  %v1579_v18 = vld [vmem:[%s2199_s8 + $0x64] ss:$8 sps:$4 sm:$0xff]  }
  0x88   :  { %247 = vmatpush1.bf16.msra.mxu0 %v1503_v30  ;;  %368 = vmatpush1.bf16.msra.mxu1 %v1504_v31  ;;  %v1577_v19 = vld [vmem:[%s2199_s8 + $0x60] ss:$8 sps:$4 sm:$0xff]   ;;  %v1582_v20 = vld [vmem:[%s2199_s8 + $0x74] ss:$8 sps:$4 sm:$0xff]   ;;  %v1580_v21 = vld [vmem:[%s2199_s8 + $0x70] ss:$8 sps:$4 sm:$0xff]  }
  0x89   :  { %248 = vmatprep.subr.bf16.mxu0 %v1505_v32  ;;  %369 = vmatprep.subr.bf16.mxu1 %v1507_v33  ;;  %v1585_v22 = vld [vmem:[%s2199_s8 + $0x84] ss:$8 sps:$4 sm:$0xff]   ;;  %v1583_v23 = vld [vmem:[%s2199_s8 + $0x80] ss:$8 sps:$4 sm:$0xff]   ;;  %v1588_v24 = vld [vmem:[%s2199_s8 + $0x94] ss:$8 sps:$4 sm:$0xff]  }
  0x8a   :  { %v1586_v25 = vld [vmem:[%s2199_s8 + $0x90] ss:$8 sps:$4 sm:$0xff]   ;;  %v1591_v26 = vld [vmem:[%s2199_s8 + $0xa4] ss:$8 sps:$4 sm:$0xff]   ;;  %v1589_v27 = vld [vmem:[%s2199_s8 + $0xa0] ss:$8 sps:$4 sm:$0xff]  }
  0x8b   :  { %v1594_v28 = vld [vmem:[%s2199_s8 + $0xb4] ss:$8 sps:$4 sm:$0xff]   ;;  %v1592_v30 = vld [vmem:[%s2199_s8 + $0xb0] ss:$8 sps:$4 sm:$0xff]   ;;  %v1597_v31 = vld [vmem:[%s2199_s8 + $0xc4] ss:$8 sps:$4 sm:$0xff]  }
  0x8c   :  { %249 = vmatpush1.bf16.msra.mxu0 %v1509_v34  ;;  %370 = vmatpush1.bf16.msra.mxu1 %v1510_v35  ;;  %v1595_v32 = vld [vmem:[%s2199_s8 + $0xc0] ss:$8 sps:$4 sm:$0xff]   ;;  %v1600_v33 = vld [vmem:[%s2199_s8 + $0xd4] ss:$8 sps:$4 sm:$0xff]   ;;  %v1598_v34 = vld [vmem:[%s2199_s8 + $0xd0] ss:$8 sps:$4 sm:$0xff]   ;;  %v398_v35 = vlaneseq }
  0x8d   :  { %618 = vmatprep.subr.bf16.mxu0 %v1513_v36  ;;  %867 = vmatprep.subr.bf16.mxu1 %v1561_v7  ;;  %v119_v7 = vpack.c.bf16 %v1968_v29, %v1968_v29  ;;  %v1615_v29 = vld [vmem:[#allocation9 + $0x8] sm:$0xff]   ;;  %vm1034_vm1 = vcmask 261120  }
  0x8e   :  { %v399_v36 = vshrl.u32 %v398_v35, 7  ;;  %v1627_v35 = vld [vmem:[#allocation9 + $0xb8] sm:$0xff]  }
  0x8f   :  { %267 = vmatmul.mubr.bf16.vlgmr.msra.gmra.mrb[0].mxu0 %v137_v37  ;;  %388 = vmatmul.mubr.bf16.vlgmr.msra.gmra.mrb[0].mxu1 %v120_v38  ;;  %v396_v38 = vld [vmem:[#allocation4] sm:$0x3] }
  0x90   :  { %619 = vmatpush1.bf16.msra.mxu0 %v1511_v39  ;;  %868 = vmatpush1.bf16.msra.mxu1 %v1559_v6  ;;  %v2159_v37 = vsub.s32 0, %v399_v36  ;;  %v2161_v39 = vsub.s32 1, %v399_v36  ;;  %v1616_v6 = vld [vmem:[#allocation9 + $0x48] sm:$0xff]   ;;  %v1628_v36 = vld [vmem:[#allocation9 + $0x78] sm:$0xff]  }
  0x91   :  { %620 = vmatprep.subr.bf16.mxu0 %v1516_v40  ;;  %869 = vmatprep.subr.bf16.mxu1 %v1564_v8  ;;  %v446_v8 = vld [vmem:[#allocation6] sm:$0x3] }
  0x92   :  { %v401_v40 = vrot.slane %v396_v38, %v2159_v37 }
  0x94   :  { %621 = vmatpush1.bf16.msra.mxu0 %v1514_v41  ;;  %870 = vmatpush1.bf16.msra.mxu1 %v1562_v9  ;;  %v451_v9 = vrot.slane %v446_v8, %v2159_v37 }
  0x95   :  { %622 = vmatprep.subr.bf16.mxu0 %v1519_v42  ;;  %871 = vmatprep.subr.bf16.mxu1 %v1567_v10  ;;  %v455_v10 = vrot.slane %v446_v8, %v2161_v39 }
  0x98   :  { %623 = vmatpush1.bf16.msra.mxu0 %v1517_v43  ;;  %872 = vmatpush1.bf16.msra.mxu1 %v1565_v11  ;;  %v405_v43 = vrot.slane %v396_v38, %v2161_v39  ;;  %v1629_v38 = vld [vmem:[#allocation9 + $0xc0] sm:$0xff]  }
  0x99   :  { %624 = vmatprep.subr.bf16.mxu0 %v1522_v44  ;;  %873 = vmatprep.subr.bf16.mxu1 %v1570_v12 }
  0x9c   :  { %625 = vmatpush1.bf16.msra.mxu0 %v1520_v45  ;;  %874 = vmatpush1.bf16.msra.mxu1 %v1568_v13 }
  0x9d   :  { %626 = vmatprep.subr.bf16.mxu0 %v1525_v46  ;;  %875 = vmatprep.subr.bf16.mxu1 %v1573_v14 }
  0xa0   :  { %627 = vmatpush1.bf16.msra.mxu0 %v1523_v47  ;;  %876 = vmatpush1.bf16.msra.mxu1 %v1571_v15 }
  0xa1   :  { %628 = vmatprep.subr.bf16.mxu0 %v1528_v48  ;;  %877 = vmatprep.subr.bf16.mxu1 %v1576_v16 }
  0xa4   :  { %629 = vmatpush1.bf16.msra.mxu0 %v1526_v49  ;;  %878 = vmatpush1.bf16.msra.mxu1 %v1574_v17 }
  0xa5   :  { %630 = vmatprep.subr.bf16.mxu0 %v1531_v50  ;;  %879 = vmatprep.subr.bf16.mxu1 %v1579_v18 }
  0xa8   :  { %631 = vmatpush1.bf16.msra.mxu0 %v1529_v51  ;;  %880 = vmatpush1.bf16.msra.mxu1 %v1577_v19 }
  0xa9   :  { %632 = vmatprep.subr.bf16.mxu0 %v1534_v52  ;;  %881 = vmatprep.subr.bf16.mxu1 %v1582_v20  ;;  %v1613_v20 = vld [vmem:[#allocation9] sm:$0xff]  }
  0xac   :  { %633 = vmatpush1.bf16.msra.mxu0 %v1532_v53  ;;  %882 = vmatpush1.bf16.msra.mxu1 %v1580_v21 }
  0xad   :  { %634 = vmatprep.subr.bf16.mxu0 %v1537_v54  ;;  %883 = vmatprep.subr.bf16.mxu1 %v1585_v22  ;;  %v912_v22 = vld [vmem:[%s2191_s0] sm:$0x3] }
  0xb0   :  { %635 = vmatpush1.bf16.msra.mxu0 %v1535_v55  ;;  %884 = vmatpush1.bf16.msra.mxu1 %v1583_v23  ;;  %v1617_v23 = vld [vmem:[#allocation9 + $0x90] sm:$0xff]  }
  0xb1   :  { %636 = vmatprep.subr.bf16.mxu0 %v1540_v56  ;;  %885 = vmatprep.subr.bf16.mxu1 %v1588_v24  ;;  %v913_v24 = vpack.c.bf16 %v912_v22, %v912_v22 }
  0xb4   :  { %637 = vmatpush1.bf16.msra.mxu0 %v1538_v57  ;;  %886 = vmatpush1.bf16.msra.mxu1 %v1586_v25  ;;  %v1618_v25 = vld [vmem:[#allocation9 + $0x50] sm:$0xff]  }
  0xb5   :  { %638 = vmatprep.subr.bf16.mxu0 %v1543_v58  ;;  %887 = vmatprep.subr.bf16.mxu1 %v1591_v26  ;;  %v1603_v58 = vld [vmem:[%s2199_s8 + $0xe4] ss:$8 sps:$4 sm:$0xff]  }
  0xb6   :  { %v1619_v26 = vld [vmem:[#allocation9 + $0x98] sm:$0xff]  }
  0xb8   :  { %639 = vmatpush1.bf16.msra.mxu0 %v1541_v59  ;;  %888 = vmatpush1.bf16.msra.mxu1 %v1589_v27  ;;  %v1601_v59 = vld [vmem:[%s2199_s8 + $0xe0] ss:$8 sps:$4 sm:$0xff]  }
  0xb9   :  { %640 = vmatprep.subr.bf16.mxu0 %v1546_v60  ;;  %889 = vmatprep.subr.bf16.mxu1 %v1594_v28  ;;  %v1606_v60 = vld [vmem:[%s2199_s8 + $0xf4] ss:$8 sps:$4 sm:$0xff]   ;;  %v1621_v28 = vld [vmem:[#allocation9 + $0xa0] sm:$0xff]  }
  0xba   :  { %v1620_v27 = vld [vmem:[#allocation9 + $0x58] sm:$0xff]  }
  0xbc   :  { %641 = vmatpush1.bf16.msra.mxu0 %v1544_v61  ;;  %890 = vmatpush1.bf16.msra.mxu1 %v1592_v30  ;;  %v1604_v61 = vld [vmem:[%s2199_s8 + $0xf0] ss:$8 sps:$4 sm:$0xff]   ;;  %v1622_v30 = vld [vmem:[#allocation9 + $0x60] sm:$0xff]  }
  0xbd   :  { %642 = vmatprep.subr.bf16.mxu0 %v1549_v62  ;;  %891 = vmatprep.subr.bf16.mxu1 %v1597_v31  ;;  %v1607_v62 = vld [vmem:[#allocation9 + $0x10] sm:$0xff]   ;;  %v1623_v31 = vld [vmem:[#allocation9 + $0xa8] sm:$0xff]  }
  0xc0   :  { %643 = vmatpush1.bf16.msra.mxu0 %v1547_v63  ;;  %892 = vmatpush1.bf16.msra.mxu1 %v1595_v32  ;;  %v1784_v63 = vmov 0.0   ;;  %v1624_v32 = vld [vmem:[#allocation9 + $0x68] sm:$0xff]  }
  0xc1   :  { %644 = vmatprep.subr.bf16.mxu0 %v1552_v0  ;;  %893 = vmatprep.subr.bf16.mxu1 %v1600_v33  ;;  %v1608_v0 = vld [vmem:[#allocation9 + $0x18] sm:$0xff]   ;;  %v1625_v33 = vld [vmem:[#allocation9 + $0xb0] sm:$0xff]  }
  0xc4   :  { %645 = vmatpush1.bf16.msra.mxu0 %v1550_v1  ;;  %894 = vmatpush1.bf16.msra.mxu1 %v1598_v34  ;;  %v1609_v1 = vld [vmem:[#allocation9 + $0x20] sm:$0xff]   ;;  %v1626_v34 = vld [vmem:[#allocation9 + $0x70] sm:$0xff]  }
  0xc5   :  { %646 = vmatprep.subr.bf16.mxu0 %v1555_v2  ;;  %895 = vmatprep.subr.bf16.mxu1 %v1603_v58  ;;  %v1610_v2 = vld [vmem:[#allocation9 + $0x28] sm:$0xff]  }
  0xc8   :  { %647 = vmatpush1.bf16.msra.mxu0 %v1553_v3  ;;  %896 = vmatpush1.bf16.msra.mxu1 %v1601_v59  ;;  %v1611_v3 = vld [vmem:[#allocation9 + $0x30] sm:$0xff]  }
  0xc9   :  { %648 = vmatprep.subr.bf16.mxu0 %v1558_v4  ;;  %897 = vmatprep.subr.bf16.mxu1 %v1606_v60  ;;  %v1612_v4 = vld [vmem:[#allocation9 + $0x38] sm:$0xff]  }
  0xcc   :  { %649 = vmatpush1.bf16.msra.mxu0 %v1556_v5  ;;  %898 = vmatpush1.bf16.msra.mxu1 %v1604_v61  ;;  %v1614_v5 = vld [vmem:[#allocation9 + $0x40] sm:$0xff]  }
  0xcd   :  { %1422 = vmatprep.subr.bf16.mxu0 %v1784_v63  ;;  %1442 = vmatprep.subr.bf16.mxu1 %v1784_v63 }
 0x162   :  { %v268_v41 = vpop.f32.mrb[0].mxu0  ;;  %v389_v42 = vpop.f32.mrb[0].mxu1 }
 0x163   :  { %v390_v44 = vadd.f32 %v389_v42, %v268_v41  ;;  %v270_v45 = vpop.f32.mrb[1].mxu0  ;;  %v391_v46 = vpop.f32.mrb[1].mxu1  ;;  %v1631_v41 = vld [vmem:[#allocation9 + $0xc8] sm:$0xff]  }
 0x164   :  { %v392_v47 = vadd.f32 %v391_v46, %v270_v45  ;;  %v272_v48 = vpop.f32.mrb[2].mxu0  ;;  %v393_v49 = vpop.f32.mrb[2].mxu1  ;;  %v1632_v42 = vld [vmem:[#allocation9 + $0x88] sm:$0xff]  }
 0x165   :  { %v408_v50 = vadd.f32 %v401_v40, %v390_v44  ;;  %v273_v51 = vpop.f32.mrb[3].mxu0  ;;  %v394_v52 = vpop.f32.mrb[3].mxu1  ;;  %v1630_v40 = vld [vmem:[#allocation9 + $0x80] sm:$0xff]  }
 0x166   :  { %v409_v53 = vadd.f32 %v405_v43, %v392_v47  ;;  %v695_v47 = vld [vmem:[#allocation7] sm:$0x3] }
 0x167   :  { %v410_v54 = vmax.f32 %v408_v50, 0.0  ;;  %v700_v48 = vrot.slane %v695_v47, %v2159_v37  ;;  %v704_v49 = vrot.slane %v695_v47, %v2161_v39 }
 0x168   :  { %v411_v55 = vmax.f32 %v409_v53, 0.0 }
 0x169   :  { %v412_v57 = vpack.c.bf16 %v410_v54, %v410_v54 }
 0x16a   :  { %v413_v56 = vpack.c.bf16 %v411_v55, %v411_v55 }
 0x16c   :  { %650 = vmatprep.mubr.bf16.mxu0 %v413_v56 }
 0x16d   :  { %651 = vmatmul.mubr.bf16.vlgmr.msra.gmra.mrb[4].mxu0 %v412_v57 }
 0x16e   :  { %1423 = vmatpush3.bf16.msra.mxu0 %v1607_v62  ;;  %1438 = vmatprep.mubr.msk.bf16.mxu0 %vm1785_vm0, %v1784_v63 }
 0x16f   :  { %1424 = vmatprep.subr.bf16.mxu0 %v1784_v63 }
 0x172   :  { %1425 = vmatpush3.bf16.msra.mxu0 %v1608_v0 }
 0x173   :  { %1426 = vmatprep.subr.bf16.mxu0 %v1784_v63 }
 0x176   :  { %1427 = vmatpush3.bf16.msra.mxu0 %v1609_v1 }
 0x177   :  { %1428 = vmatprep.subr.bf16.mxu0 %v1784_v63 }
 0x17a   :  { %1429 = vmatpush3.bf16.msra.mxu0 %v1610_v2 }
 0x17b   :  { %1430 = vmatprep.subr.bf16.mxu0 %v1784_v63 }
 0x17e   :  { %1431 = vmatpush3.bf16.msra.mxu0 %v1611_v3  ;;  %v1387_v3 = vld [vmem:[#allocation10] ss:$0 sm:$0xff] }
 0x17f   :  { %1432 = vmatprep.subr.bf16.mxu0 %v1784_v63 }
 0x182   :  { %1433 = vmatpush3.bf16.msra.mxu0 %v1612_v4 }
 0x183   :  { %1434 = vmatprep.subr.bf16.mxu0 %v1784_v63 }
 0x186   :  { %1435 = vmatpush3.bf16.msra.mxu0 %v1614_v5 }
 0x187   :  { %1436 = vmatprep.subr.bf16.mxu0 %v1784_v63 }
 0x18a   :  { %1437 = vmatpush3.bf16.msra.mxu0 %v1616_v6 }
 0x18d   :  { %1439 = vmatmul.mubr.bf16.vlgmr.msra.gmra.mrb[8].mxu0 %v119_v7 }
 0x240   :  { %v652_v11 = vpop.f32.mrb[4].mxu0 }
 0x241   :  { %v653_v12 = vadd.f32 %v652_v11, %v451_v9  ;;  %v654_v13 = vpop.f32.mrb[5].mxu0 }
 0x242   :  { %v655_v14 = vadd.f32 %v654_v13, %v455_v10  ;;  %v656_v15 = vpop.f32.mrb[6].mxu0 }
 0x243   :  { %v659_v16 = vmax.f32 %v653_v12, 0.0  ;;  %v657_v17 = vpop.f32.mrb[7].mxu0 }
 0x244   :  { %v660_v18 = vmax.f32 %v655_v14, 0.0 }
 0x245   :  { %v661_v21 = vpack.c.bf16 %v659_v16, %v659_v16 }
 0x246   :  { %v662_v19 = vpack.c.bf16 %v660_v18, %v660_v18 }
 0x248   :  { %899 = vmatprep.mubr.bf16.mxu1 %v662_v19 }
 0x249   :  { %900 = vmatmul.mubr.bf16.vlgmr.msra.gmra.mrb[4].mxu1 %v661_v21 }
 0x24a   :  { %1443 = vmatpush3.bf16.msra.mxu1 %v1613_v20  ;;  %1446 = vmatprep.mubr.msk.bf16.mxu1 %vm1785_vm0, %v1784_v63 }
 0x24b   :  { %1444 = vmatprep.subr.bf16.mxu1 %v1784_v63 }
 0x24e   :  { %1445 = vmatpush3.bf16.msra.mxu1 %v1615_v29 }
 0x24f   :  { %1400 = vmatprep.subr.bf16.mxu1 %v1617_v23 }
 0x251   :  { %1447 = vmatmul.mubr.msk.bf16.vlgmr.msra.gmra.mrb[8].mxu1 %vm1034_vm1, %v913_v24 }
 0x252   :  { %1401 = vmatpush3.bf16.msra.mxu1 %v1618_v25 }
 0x253   :  { %1402 = vmatprep.subr.bf16.mxu1 %v1619_v26 }
 0x256   :  { %1403 = vmatpush3.bf16.msra.mxu1 %v1620_v27 }
 0x257   :  { %1404 = vmatprep.subr.bf16.mxu1 %v1621_v28 }
 0x25a   :  { %1405 = vmatpush3.bf16.msra.mxu1 %v1622_v30 }
 0x25b   :  { %1406 = vmatprep.subr.bf16.mxu1 %v1623_v31 }
 0x25e   :  { %1407 = vmatpush3.bf16.msra.mxu1 %v1624_v32 }
 0x25f   :  { %1408 = vmatprep.subr.bf16.mxu1 %v1625_v33 }
 0x260   :  { %v1016_v43 = vpop.f32.mrb[8].mxu0 }
 0x261   :  { %v1440_v44 = vpop.f32.mrb[9].mxu0 }
 0x262   :  { %1409 = vmatpush3.bf16.msra.mxu1 %v1626_v34  ;;  %v1019_v45 = vpop.f32.mrb[10].mxu0 }
 0x263   :  { %1410 = vmatprep.subr.bf16.mxu1 %v1627_v35  ;;  %v1441_v46 = vpop.f32.mrb[11].mxu0 }
 0x266   :  { %1411 = vmatpush3.bf16.msra.mxu1 %v1628_v36 }
 0x267   :  { %1412 = vmatprep.subr.bf16.mxu1 %v1629_v38 }
 0x26a   :  { %1413 = vmatpush3.bf16.msra.mxu1 %v1630_v40 }
 0x26b   :  { %1414 = vmatprep.subr.bf16.mxu1 %v1631_v41 }
 0x26e   :  { %1415 = vmatpush3.bf16.msra.mxu1 %v1632_v42 }
 0x31c   :  { %v901_v50 = vpop.f32.mrb[4].mxu1 }
 0x31d   :  { %v902_v51 = vadd.f32 %v901_v50, %v700_v48  ;;  %v903_v52 = vpop.f32.mrb[5].mxu1 }
 0x31e   :  { %v904_v53 = vadd.f32 %v903_v52, %v704_v49  ;;  %v905_v54 = vpop.f32.mrb[6].mxu1 }
 0x31f   :  { %v908_v55 = vmax.f32 %v902_v51, 0.0  ;;  %v906_v56 = vpop.f32.mrb[7].mxu1 }
 0x320   :  { %v909_v57 = vmax.f32 %v904_v53, 0.0 }
 0x321   :  { %v910_v59 = vpack.c.bf16 %v908_v55, %v908_v55 }
 0x322   :  { %v911_v58 = vpack.c.bf16 %v909_v57, %v909_v57 }
 0x324   :  { %1238 = vmatprep.mubr.bf16.mxu1 %v911_v58  ;;  %v1072_v60 = vpop.f32.mrb[8].mxu1 }
 0x325   :  { %1239 = vmatmul.mubr.bf16.vlgmr.msra.gmra.mrb[12].mxu1 %v910_v59  ;;  %v1448_v61 = vpop.f32.mrb[9].mxu1  ;;  %v1073_v62 = vadd.f32 %v1072_v60, %v1016_v43 }
 0x326   :  { %v1075_v63 = vpop.f32.mrb[10].mxu1 }
 0x327   :  { %v1449_v0 = vpop.f32.mrb[11].mxu1 }
 0x3f8   :  { %v1416_v37 = vpop.f32.mrb[12].mxu1 }
 0x3f9   :  { %v1417_v1 = vpop.f32.mrb[13].mxu1 }
 0x3fa   :  { %v1418_v39 = vadd.f32 %v1417_v1, %v1416_v37  ;;  %v1419_v2 = vpop.f32.mrb[14].mxu1 }
 0x3fb   :  { %v1420_v4 = vpop.f32.mrb[15].mxu1 }
 0x3fc   :  { %v1246_v5 = vadd.f32 %v1418_v39, %v1073_v62 }
 0x3fe   :  { %v1254_v6 = vadd.f32 %v1387_v3, %v1246_v5 }
 0x400   :  { %1255 = vst [vmem:[%s2203_s12] sm:$0x3] %v1254_v6 }
 0x401   :  { %1260 = vsyncpa [#allocation3], 1 }
 0x402   :  { %1261 = vsyncpa [#allocation5], 1 }
 0x403   :  { %1262 = vsyncpa [#allocation8], 1 }
 0x404   :  { %1263 = vsyncpa [#allocation11], 1 }

</bundles_post_ra>
